<compile_context>
chip_gen: v6e
topology: v6e:2x2x1
jax: 0.10.0
libtpu: 0.0.40
codegen_flags: <defaults>
</compile_context>

<pallas_src>
import functools

import jax
import jax.numpy as jnp
from jax.experimental import pallas as pl
from jax.experimental.pallas import tpu as pltpu


def _round_up(x, m):
    return ((x + m - 1) // m) * m


# ----------------------------------------------------------------------------
# Kernel: per-split partial sums (intersection, output-sum / output^2-sum,
# target-sum) accumulated into a resident (1, C, 3) output block.
# ----------------------------------------------------------------------------
def _dice_partials_kernel(logits_ref, tgt_ref, out_ref, *,
                          n_total, block_rows, chunk_rows, ignore_label,
                          powerize, row_major):
    h = pl.program_id(0)            # which half of N (parallel axis, megacore)
    j = pl.program_id(1)            # step within the half (arbitrary axis)
    steps = pl.num_programs(1)

    @pl.when(j == 0)
    def _init():
        out_ref[...] = jnp.zeros_like(out_ref)

    c = logits_ref.shape[1] if row_major else logits_ref.shape[0]
    ck = chunk_rows
    n_chunks = block_rows // chunk_rows
    # Global row index of this block (unclamped; the index_map clamps the DMA,
    # this value drives the validity mask so duplicated tail blocks contribute 0).
    row0 = (h * steps + j) * block_rows

    cls_iota = jax.lax.broadcasted_iota(jnp.int32, (c, ck), 0)   # hoisted out of loop

    def body(t, carry):
        inter_acc, union_acc, tsum_acc = carry
        off = pl.multiple_of(t * ck, ck)

        if row_major:
            # [1] lane-dense re-layout in-kernel: (ck, C) row slab -> (C, ck).
            x = logits_ref[pl.ds(off, ck), :].astype(jnp.float32).T
        else:
            # fallback layout: logits already class-major (C, block_rows) in VMEM.
            x = logits_ref[:, pl.ds(off, ck)].astype(jnp.float32)
        tg = tgt_ref[:, pl.ds(off, ck)]                           # (1, ck) int32

        # Validity mask: ragged tail rows (>= N) and ignore_label rows.
        gidx = row0 + off + jax.lax.broadcasted_iota(jnp.int32, (1, ck), 1)
        valid = gidx < n_total
        if ignore_label is not None:
            valid = jnp.logical_and(valid, tg != ignore_label)

        # Neutralize garbage in partial tail blocks before the softmax.
        x = jnp.where(valid, x, 0.0)

        # Numerically stable softmax over the C sublane rows (exact divide on the
        # (1, ck) denominator row, per the review's correctness note).
        m = jnp.max(x, axis=0, keepdims=True)
        e = jnp.exp(x - m)
        s = jnp.sum(e, axis=0, keepdims=True)
        p = e * (1.0 / s)

        vmask = valid.astype(jnp.float32)                         # (1, ck)
        onehot = jnp.where(cls_iota == tg, vmask, 0.0)            # masked one-hot
        pm = p * vmask

        inter_acc = inter_acc + pm * onehot
        union_acc = union_acc + (pm * pm if powerize else pm)     # mask is {0,1}
        tsum_acc = tsum_acc + onehot
        return inter_acc, union_acc, tsum_acc

    z = jnp.zeros((c, ck), jnp.float32)
    inter_acc, union_acc, tsum_acc = jax.lax.fori_loop(
        0, n_chunks, body, (z, z, z), unroll=(n_chunks <= 8))

    # [2] Fold once per grid step into the resident per-split partial block.
    out_ref[0, :, 0:1] += jnp.sum(inter_acc, axis=-1, keepdims=True)
    out_ref[0, :, 1:2] += jnp.sum(union_acc, axis=-1, keepdims=True)
    out_ref[0, :, 2:3] += jnp.sum(tsum_acc, axis=-1, keepdims=True)


# ----------------------------------------------------------------------------
# Generation-aware VMEM budgeting.  [4]
# ----------------------------------------------------------------------------
def _vmem_params():
    try:
        phys = int(pltpu.get_tpu_info().vmem_capacity_bytes)
    except Exception:
        phys = 64 * 1024 * 1024          # conservative: v7x per-core VMEM
    budget = (phys * 3) // 8             # tile-chooser budget (48 MiB on 128-MiB parts)
    limit = phys // 2                    # Mosaic scoped-VMEM limit (64 / 32 MiB)
    return budget, limit


def _pick_block_rows(n, c, itemsize, row_major, budget, logits_buffers):
    """VMEM accounting with lane/sublane rounding + pipeline depth + headroom. [3][6]"""
    if row_major:
        c_alloc = _round_up(c, 128)                       # (bn, C) tile: lanes padded to 128
    else:
        pack = max(1, 4 // max(itemsize, 1))              # f32:1, bf16:2, int8:4
        c_alloc = _round_up(c, 8 * pack)                  # (C, bn) tile: sublanes padded
    logits_bytes_per_row = c_alloc * itemsize
    tgt_bytes_per_row = 8 * 4                             # (1, bn) int32, sublane-padded
    per_row = logits_buffers * logits_bytes_per_row + 2 * tgt_bytes_per_row
    headroom = 4 * 1024 * 1024                            # loop intermediates + Mosaic scratch
    usable = max(budget - headroom, 1024 * 1024)
    bn = usable // per_row
    return max(128, (bn // 128) * 128)


# ----------------------------------------------------------------------------
# pallas_call wrapper producing per-split partial sums, shape (2, C, 3).
# ----------------------------------------------------------------------------
def _dice_partials(output, target, *, ignore_label, powerize, row_major,
                   block_rows, logits_buffers, vmem_budget_bytes, vmem_limit_bytes):
    n, c = output.shape
    itemsize = jnp.dtype(output.dtype).itemsize

    if n < 128:
        bn = n                                            # single partial block
    elif block_rows is not None:
        bn = max(128, (int(block_rows) // 128) * 128)
        bn = min(bn, _round_up(pl.cdiv(n, 2), 128))
    else:
        bn = _pick_block_rows(n, c, itemsize, row_major,
                              vmem_budget_bytes, logits_buffers)
        bn = min(bn, _round_up(pl.cdiv(n, 2), 128))       # no point exceeding N/2 per split

    if bn % 128 != 0:
        ck = bn
    else:
        ck = 512 if bn % 512 == 0 else (256 if bn % 256 == 0 else 128)
    assert bn % ck == 0

    total_blocks = pl.cdiv(n, bn)
    n_splits = 2                                          # [5] leading parallel axis
    steps = pl.cdiv(total_blocks, n_splits)
    last_block = total_blocks - 1

    def blk(h, j):
        # Clamp so a fully-out-of-range tail block re-reads the last valid block;
        # the kernel masks it to zero via the (unclamped) global row index.
        return jnp.minimum(h * steps + j, last_block)

    spec_kwargs = {}
    if logits_buffers and logits_buffers != 2:            # [8] optional deeper pipelining
        spec_kwargs["pipeline_mode"] = pl.Buffered(int(logits_buffers))

    if row_major:
        logits_in = output                                # [1] no wrapper copy at all
        logits_spec = pl.BlockSpec((bn, c), lambda h, j: (blk(h, j), 0), **spec_kwargs)
    else:
        logits_in = output.T                              # fallback: class-major copy
        logits_spec = pl.BlockSpec((c, bn), lambda h, j: (0, blk(h, j)), **spec_kwargs)

    tgt2d = target.astype(jnp.int32).reshape(1, n)

    kernel = functools.partial(
        _dice_partials_kernel, n_total=n, block_rows=bn, chunk_rows=ck,
        ignore_label=ignore_label, powerize=powerize, row_major=row_major)

    return pl.pallas_call(
        kernel,
        out_shape=jax.ShapeDtypeStruct((n_splits, c, 3), jnp.float32),
        grid_spec=pltpu.PrefetchScalarGridSpec(
            num_scalar_prefetch=0,
            grid=(n_splits, steps),
            in_specs=[
                logits_spec,
                pl.BlockSpec((1, bn), lambda h, j: (0, blk(h, j))),
            ],
            out_specs=pl.BlockSpec((1, c, 3), lambda h, j: (h, 0, 0)),
        ),
        compiler_params=pltpu.CompilerParams(
            dimension_semantics=("parallel", "arbitrary"),
            vmem_limit_bytes=int(vmem_limit_bytes),
        ),
    )(logits_in, tgt2d)


# ----------------------------------------------------------------------------
# One-time probe: can Mosaic lower the row-tile (in-kernel transpose) path?  [1]
# ----------------------------------------------------------------------------
@functools.lru_cache(maxsize=None)
def _row_tile_supported(n_classes, dtype_str):
    try:
        budget, limit = _vmem_params()
        x = jax.ShapeDtypeStruct((1024, n_classes), jnp.dtype(dtype_str))
        t = jax.ShapeDtypeStruct((1024,), jnp.int32)
        fn = functools.partial(_dice_partials, ignore_label=None, powerize=False,
                               row_major=True, block_rows=None, logits_buffers=2,
                               vmem_budget_bytes=budget, vmem_limit_bytes=limit)
        jax.jit(fn).lower(x, t).compile()
        return True
    except Exception:
        return False


# ----------------------------------------------------------------------------
# Public entry point: matches DICELoss.forward semantics.
# ----------------------------------------------------------------------------
def dice_loss(output, target, *, ignore_label=None, powerize=False, use_tmask=False,
              block_rows=None, logits_buffers=2, vmem_budget_bytes=None,
              vmem_limit_bytes=None, layout=None):
    n, c = output.shape
    budget, limit = _vmem_params()
    if vmem_budget_bytes is None:
        vmem_budget_bytes = budget
    if vmem_limit_bytes is None:
        vmem_limit_bytes = limit

    if layout is None:
        row_major = _row_tile_supported(int(c), str(jnp.dtype(output.dtype)))
    else:
        row_major = (layout == "row")

    partials = _dice_partials(
        output, target, ignore_label=ignore_label, powerize=powerize,
        row_major=row_major, block_rows=block_rows, logits_buffers=logits_buffers,
        vmem_budget_bytes=vmem_budget_bytes, vmem_limit_bytes=vmem_limit_bytes)

    # [5] trivial per-class combine of the two per-split partials in plain JAX f32.
    sums = partials.sum(axis=0)                    # (C, 3)
    inter, psum, tsum = sums[:, 0], sums[:, 1], sums[:, 2]
    union = psum + tsum + 1e-12
    if use_tmask:
        tmask = (tsum > 0).astype(jnp.float32)
    else:
        tmask = jnp.ones_like(tsum)
    iou = (tmask * 2.0 * inter / union).sum() / (tmask.sum() + 1e-12)
    return (1.0 - iou).astype(jnp.float32)


# ----------------------------------------------------------------------------
# Pure-JAX reference (mirrors the PyTorch module) for validation.
# ----------------------------------------------------------------------------
def _dice_loss_ref(output, target, *, ignore_label=None, powerize=False,
                   use_tmask=False):
    output = jnp.asarray(output, jnp.float32)
    if ignore_label is not None:
        keep = target != ignore_label
        output = output[keep]
        target = target[keep]
    c = output.shape[1]
    p = jax.nn.softmax(output, axis=-1)
    oh = jax.nn.one_hot(target, c, dtype=jnp.float32)
    inter = (p * oh).sum(0)
    if powerize:
        union = (p * p).sum(0) + oh.sum(0) + 1e-12
    else:
        union = p.sum(0) + oh.sum(0) + 1e-12
    if use_tmask:
        tmask = (oh.sum(0) > 0).astype(jnp.float32)
    else:
        tmask = jnp.ones((c,), jnp.float32)
    iou = (tmask * 2.0 * inter / union).sum() / (tmask.sum() + 1e-12)
    return 1.0 - iou


if __name__ == "__main__":
    key = jax.random.PRNGKey(0)
    k1, k2, k3, k4, k5, k6 = jax.random.split(key, 6)

    # Test 1: defaults; N not a multiple of 128 (exercises the in-kernel tail mask).
    n1, c1 = 200, 4
    x1 = jax.random.normal(k1, (n1, c1), dtype=jnp.float32)
    t1 = jax.random.randint(k2, (n1,), 0, c1, dtype=jnp.int32)
    got1 = jax.block_until_ready(dice_loss(x1, t1))
    ref1 = _dice_loss_ref(x1, t1)
    assert jnp.allclose(got1, ref1, atol=1e-3, rtol=1e-3), (got1, ref1)

    # Test 2: odd number of row blocks (exercises the clamped, fully-masked tail
    # block), multi-step accumulation per split, ignore_label + powerize + use_tmask.
    n2, c2 = 777, 5
    x2 = jax.random.normal(k3, (n2, c2), dtype=jnp.float32)
    t2 = jax.random.randint(k4, (n2,), 0, c2, dtype=jnp.int32)
    got2 = jax.block_until_ready(
        dice_loss(x2, t2, ignore_label=0, powerize=True, use_tmask=True,
                  block_rows=128))
    ref2 = _dice_loss_ref(x2, t2, ignore_label=0, powerize=True, use_tmask=True)
    assert jnp.allclose(got2, ref2, atol=1e-3, rtol=1e-3), (got2, ref2)

    # Test 3: auto-sized block with a multi-chunk in-block loop.
    n3, c3 = 2048, 4
    x3 = jax.random.normal(k5, (n3, c3), dtype=jnp.float32)
    t3 = jax.random.randint(k6, (n3,), 0, c3, dtype=jnp.int32)
    got3 = jax.block_until_ready(dice_loss(x3, t3))
    ref3 = _dice_loss_ref(x3, t3)
    assert jnp.allclose(got3, ref3, atol=1e-3, rtol=1e-3), (got3, ref3)

    print("KERNEL_OK")
</pallas_src>

<mosaic_0001>
module attributes {stable_mosaic.version = 11 : i64} {
  func.func @_dice_partials_kernel(%arg0: i32, %arg1: i32, %arg2: memref<4x128xf32, #tpu.memory_space<vmem>>, %arg3: memref<1x128xi32, #tpu.memory_space<vmem>>, %arg4: memref<1x4x3xf32, #tpu.memory_space<vmem>>) attributes {dimension_semantics = [#tpu.dimension_semantics<parallel>, #tpu.dimension_semantics<arbitrary>], iteration_bounds = array<i64: 2, 1>, scalar_prefetch = 0 : i64, scratch_operands = 0 : i64, tpu.core_type = #tpu.core_type<tc>, window_params = [{transform_indices = @transform_0, window_bounds = array<i64: 4, 128>}, {transform_indices = @transform_1, window_bounds = array<i64: 1, 128>}, {transform_indices = @transform_2, window_bounds = array<i64: 1, 4, 3>}]} {
    %c0_i32 = arith.constant 0 : i32
    %0 = arith.cmpi eq, %arg1, %c0_i32 : i32
    %1 = arith.extui %0 : i1 to i32
    %c0_i32_0 = arith.constant 0 : i32
    %2 = arith.cmpi ne, %1, %c0_i32_0 : i32
    scf.if %2 {
      %cst_29 = arith.constant 0.000000e+00 : f32
      %73 = vector.broadcast %cst_29 : f32 to vector<1x4x3xf32>
      %c0_30 = arith.constant 0 : index
      %c0_31 = arith.constant 0 : index
      %c0_32 = arith.constant 0 : index
      %74 = vector.load %arg4[%c0_30, %c0_31, %c0_32] : memref<1x4x3xf32, #tpu.memory_space<vmem>>, vector<1x4x3xf32>
      tpu.vector_store %arg4[%c0_30, %c0_31, %c0_32], %73 {strides = array<i32>} : memref<1x4x3xf32, #tpu.memory_space<vmem>>, vector<1x4x3xf32>,
    } else {
    }
    %c1_i32 = arith.constant 1 : i32
    %3 = arith.muli %arg0, %c1_i32 : i32
    %4 = arith.addi %3, %arg1 : i32
    %c128_i32 = arith.constant 128 : i32
    %5 = arith.muli %4, %c128_i32 : i32
    %6 = tpu.iota {dimensions = array<i32: 0>} : vector<4x128xi32>
    %cst = arith.constant 0.000000e+00 : f32
    %7 = vector.broadcast %cst : f32 to vector<4x128xf32>
    %c0_i32_1 = arith.constant 0 : i32
    %c128_i32_2 = arith.constant 128 : i32
    %8 = arith.muli %c0_i32_1, %c128_i32_2 : i32
    %9 = tpu.assume_multiple %8, 128 : i32
    %c0 = arith.constant 0 : index
    %10 = arith.index_cast %9 : i32 to index
    %11 = vector.load %arg2[%c0, %10] : memref<4x128xf32, #tpu.memory_space<vmem>>, vector<4x128xf32>
    %c0_3 = arith.constant 0 : index
    %12 = arith.index_cast %9 : i32 to index
    %13 = vector.load %arg3[%c0_3, %12] : memref<1x128xi32, #tpu.memory_space<vmem>>, vector<1x128xi32>
    %14 = arith.addi %5, %9 : i32
    %15 = tpu.iota {dimensions = array<i32: 1>} : vector<1x128xi32>
    %16 = vector.broadcast %14 : i32 to vector<1x128xi32>
    %17 = arith.addi %16, %15 : vector<1x128xi32>
    %c200_i32 = arith.constant 200 : i32
    %18 = vector.broadcast %c200_i32 : i32 to vector<1x128xi32>
    %19 = arith.cmpi slt, %17, %18 : vector<1x128xi32>
    %cst_4 = arith.constant 0.000000e+00 : f32
    %20 = vector.shape_cast %19 : vector<1x128xi1> to vector<1x128xi1>
    %21 = vector.broadcast %20 : vector<1x128xi1> to vector<4x128xi1>
    %22 = vector.broadcast %cst_4 : f32 to vector<4x128xf32>
    %23 = arith.select %21, %11, %22 : vector<4x128xi1>, vector<4x128xf32>
    %cst_5 = arith.constant dense<0xFF800000> : vector<128xf32>
    %24 = vector.multi_reduction <maximumf>, %23, %cst_5 [0] : vector<4x128xf32> to vector<128xf32>
    %25 = vector.shape_cast %24 : vector<128xf32> to vector<1x128xf32>
    %26 = vector.broadcast %25 : vector<1x128xf32> to vector<4x128xf32>
    %27 = arith.subf %23, %26 : vector<4x128xf32>
    %28 = math.exp %27 : vector<4x128xf32>
    %cst_6 = arith.constant dense<0.000000e+00> : vector<128xf32>
    %29 = vector.multi_reduction <add>, %28, %cst_6 [0] : vector<4x128xf32> to vector<128xf32>
    %30 = vector.shape_cast %29 : vector<128xf32> to vector<1x128xf32>
    %cst_7 = arith.constant 1.000000e+00 : f32
    %31 = vector.broadcast %cst_7 : f32 to vector<1x128xf32>
    %32 = arith.divf %31, %30 : vector<1x128xf32>
    %33 = vector.broadcast %32 : vector<1x128xf32> to vector<4x128xf32>
    %34 = arith.mulf %28, %33 : vector<4x128xf32>
    %35 = arith.extui %19 : vector<1x128xi1> to vector<1x128xi32>
    %36 = arith.sitofp %35 : vector<1x128xi32> to vector<1x128xf32>
    %37 = vector.broadcast %13 : vector<1x128xi32> to vector<4x128xi32>
    %38 = arith.cmpi eq, %6, %37 : vector<4x128xi32>
    %cst_8 = arith.constant 0.000000e+00 : f32
    %39 = vector.shape_cast %36 : vector<1x128xf32> to vector<1x128xf32>
    %40 = vector.broadcast %39 : vector<1x128xf32> to vector<4x128xf32>
    %41 = vector.broadcast %cst_8 : f32 to vector<4x128xf32>
    %42 = arith.select %38, %40, %41 : vector<4x128xi1>, vector<4x128xf32>
    %43 = vector.broadcast %36 : vector<1x128xf32> to vector<4x128xf32>
    %44 = arith.mulf %34, %43 : vector<4x128xf32>
    %45 = arith.mulf %44, %42 : vector<4x128xf32>
    %46 = arith.addf %7, %45 : vector<4x128xf32>
    %47 = arith.addf %7, %44 : vector<4x128xf32>
    %48 = arith.addf %7, %42 : vector<4x128xf32>
    %c1_i32_9 = arith.constant 1 : i32
    %c0_10 = arith.constant 0 : index
    %c0_11 = arith.constant 0 : index
    %c0_12 = arith.constant 0 : index
    %49 = vector.load %arg4[%c0_10, %c0_11, %c0_12] : memref<1x4x3xf32, #tpu.memory_space<vmem>>, vector<1x4x1xf32>
    %50 = vector.shape_cast %49 : vector<1x4x1xf32> to vector<4x1xf32>
    %cst_13 = arith.constant dense<0.000000e+00> : vector<4xf32>
    %51 = vector.multi_reduction <add>, %46, %cst_13 [1] : vector<4x128xf32> to vector<4xf32>
    %52 = vector.shape_cast %51 : vector<4xf32> to vector<4x1xf32>
    %53 = arith.addf %50, %52 : vector<4x1xf32>
    %c0_14 = arith.constant 0 : index
    %c0_15 = arith.constant 0 : index
    %c0_16 = arith.constant 0 : index
    %54 = vector.load %arg4[%c0_14, %c0_15, %c0_16] : memref<1x4x3xf32, #tpu.memory_space<vmem>>, vector<1x4x1xf32>
    %55 = vector.shape_cast %54 : vector<1x4x1xf32> to vector<4x1xf32>
    %56 = vector.shape_cast %53 : vector<4x1xf32> to vector<1x4x1xf32>
    tpu.vector_store %arg4[%c0_14, %c0_15, %c0_16], %56 {strides = array<i32>} : memref<1x4x3xf32, #tpu.memory_space<vmem>>, vector<1x4x1xf32>,
    %c0_17 = arith.constant 0 : index
    %c0_18 = arith.constant 0 : index
    %c1 = arith.constant 1 : index
    %57 = vector.load %arg4[%c0_17, %c0_18, %c1] : memref<1x4x3xf32, #tpu.memory_space<vmem>>, vector<1x4x1xf32>
    %58 = vector.shape_cast %57 : vector<1x4x1xf32> to vector<4x1xf32>
    %cst_19 = arith.constant dense<0.000000e+00> : vector<4xf32>
    %59 = vector.multi_reduction <add>, %47, %cst_19 [1] : vector<4x128xf32> to vector<4xf32>
    %60 = vector.shape_cast %59 : vector<4xf32> to vector<4x1xf32>
    %61 = arith.addf %58, %60 : vector<4x1xf32>
    %c0_20 = arith.constant 0 : index
    %c0_21 = arith.constant 0 : index
    %c1_22 = arith.constant 1 : index
    %62 = vector.load %arg4[%c0_20, %c0_21, %c1_22] : memref<1x4x3xf32, #tpu.memory_space<vmem>>, vector<1x4x1xf32>
    %63 = vector.shape_cast %62 : vector<1x4x1xf32> to vector<4x1xf32>
    %64 = vector.shape_cast %61 : vector<4x1xf32> to vector<1x4x1xf32>
    tpu.vector_store %arg4[%c0_20, %c0_21, %c1_22], %64 {strides = array<i32>} : memref<1x4x3xf32, #tpu.memory_space<vmem>>, vector<1x4x1xf32>,
    %c0_23 = arith.constant 0 : index
    %c0_24 = arith.constant 0 : index
    %c2 = arith.constant 2 : index
    %65 = vector.load %arg4[%c0_23, %c0_24, %c2] : memref<1x4x3xf32, #tpu.memory_space<vmem>>, vector<1x4x1xf32>
    %66 = vector.shape_cast %65 : vector<1x4x1xf32> to vector<4x1xf32>
    %cst_25 = arith.constant dense<0.000000e+00> : vector<4xf32>
    %67 = vector.multi_reduction <add>, %48, %cst_25 [1] : vector<4x128xf32> to vector<4xf32>
    %68 = vector.shape_cast %67 : vector<4xf32> to vector<4x1xf32>
    %69 = arith.addf %66, %68 : vector<4x1xf32>
    %c0_26 = arith.constant 0 : index
    %c0_27 = arith.constant 0 : index
    %c2_28 = arith.constant 2 : index
    %70 = vector.load %arg4[%c0_26, %c0_27, %c2_28] : memref<1x4x3xf32, #tpu.memory_space<vmem>>, vector<1x4x1xf32>
    %71 = vector.shape_cast %70 : vector<1x4x1xf32> to vector<4x1xf32>
    %72 = vector.shape_cast %69 : vector<4x1xf32> to vector<1x4x1xf32>
    tpu.vector_store %arg4[%c0_26, %c0_27, %c2_28], %72 {strides = array<i32>} : memref<1x4x3xf32, #tpu.memory_space<vmem>>, vector<1x4x1xf32>,
    return
  }
  func.func @transform_0(%arg0: i32, %arg1: i32) -> (i32, i32) {
    %c1_i32 = arith.constant 1 : i32
    %0 = arith.muli %arg0, %c1_i32 : i32
    %1 = arith.addi %0, %arg1 : i32
    %c1_i32_0 = arith.constant 1 : i32
    %2 = arith.minsi %1, %c1_i32_0 : i32
    %c0_i32 = arith.constant 0 : i32
    %c0_i32_1 = arith.constant 0 : i32
    return %c0_i32, %2 : i32, i32
  }
  func.func @transform_1(%arg0: i32, %arg1: i32) -> (i32, i32) {
    %c1_i32 = arith.constant 1 : i32
    %0 = arith.muli %arg0, %c1_i32 : i32
    %1 = arith.addi %0, %arg1 : i32
    %c1_i32_0 = arith.constant 1 : i32
    %2 = arith.minsi %1, %c1_i32_0 : i32
    %c0_i32 = arith.constant 0 : i32
    %c0_i32_1 = arith.constant 0 : i32
    return %c0_i32, %2 : i32, i32
  }
  func.func @transform_2(%arg0: i32, %arg1: i32) -> (i32, i32, i32) {
    %c0_i32 = arith.constant 0 : i32
    %c0_i32_0 = arith.constant 0 : i32
    %c0_i32_1 = arith.constant 0 : i32
    return %arg0, %c0_i32, %c0_i32_0 : i32, i32, i32
  }
}

</mosaic_0001>

<bundles_post_ra>
// kernel: tpu_custom_call.1
= control target key start
LH: loop header
LB: loop body
LE: loop exit
PB: predicated region body
PF: predicated region fallthrough
CT: control target
= control target key end

     0   :  { %7 = vsyncpa [#allocation3], 0  ;;  %s749_s0 = inlined_call_operand.hbm [shape: f32[4,200], index: 0, kind: input, shape index: {}]   ;;  %s750_s1 = inlined_call_operand.hbm [shape: s32[1,200], index: 1, kind: input, shape index: {}]   ;;  %s751_s2 = inlined_call_operand.vmem [shape: f32[2,4,3], index: 2, kind: output, shape index: {}]  }
   0x1   :  { %9 = vsyncpa [#allocation3 + $0x1], 0 }
   0x2   :  { %10 = vsyncpa [#allocation5], 0 }
   0x3   :  { %12 = vsyncpa [#allocation5 + $0x1], 0  ;;  %s607_s9 = smov 0   ;;  %s609_s10 = smov 0  }
   0x4   :  { %s611_s11 = smov 0   ;;  %s613_s12 = smov 0  }
   0x5   :  { %s615_s13 = smov 0   ;;  %s617_s14 = smov 0  }
   0x6 LB: > { %s397_s15 = sadd.s32 4294967295, %s587_s14   ;;  %s30_s16 = sadd.s32 1, %s583_s13  ;;  %s587_s14 = sphi %s617_s14, %s18_s14   ;;  %s583_s13 = sphi %s615_s13, %s759_s13   ;;  %s579_s12 = sphi %s613_s12, %s758_s12   ;;  %s575_s11 = sphi %s611_s11, %s757_s11   ;;  %s571_s10 = sphi %s609_s10, %s756_s10   ;;  %s567_s9 = sphi %s607_s9, %s755_s9  }
   0x7   : > { %p32_p0 = scmp.ge.s32.totalorder %s30_s16, 2  ;;  %p35_p1 = scmp.lt.s32.totalorder %s583_s13, 1 }
   0x8   : > { %s43_s17 = sadd.s32 1, %s575_s11  ;;  %p50_p2 = scmp.ne.s32.totalorder %s575_s11, %s571_s10 }
   0x9   : > { %s761_s16 = smov (%p32_p0, %s30_s16), 0  ;;  %p51_p4 = scmp.eq.s32.totalorder %s587_s14, 0 }
   0xa   : > { %s644_s18 = scalar_select %p35_p1, %s583_s13, 1 }
   0xb   : > { %p38_p3 = scmp.lt.s32.totalorder %s761_s16, 1  ;;  %p56_p5 = scmp.ne.s32.totalorder %s571_s10, %s567_s9 }
   0xc   : > { %p57_p6 = scmp.eq.s32.totalorder %s397_s15, 0  ;;  %p52_p7 = por %p51_p4, %p50_p2 }
   0xd   : > { %s39_s19 = scalar_select %p38_p3, %s761_s16, 1 }
   0xe   : > { %p650_p8 = por %p57_p6, %p56_p5  ;;  %p423_p10 = scmp.lt.s32.totalorder %s587_s14, 2 }
   0xf   : > { %s40_s21 = ssub.s32 %s644_s18, %s39_s19  ;;  %s657_s22 = sand.u32 1, %s575_s11  }
  0x10   : > { %p41_p9 = scmp.eq.s32.totalorder %s40_s21, 0  ;;  %s402_s23 = sshll.u32 %s644_s18, 6 }
  0x11   : > { %s401_s25 = sshll.u32 %s657_s22, 2  ;;  %s150_s28 = scalar_lea.hbm %s749_s0, %s402_s23 }
  0x12   : > { %s661_s24 = scalar_select %p41_p9, %s575_s11, %s43_s17  }
  0x13   : > { %s142_s29 = scalar_lea.vmem [#allocation2], %s401_s25  ;;  %p667_p11 = pnand %p423_p10, %p52_p7 }
  0x14   : > { %s152_s30 = sshll.u32 %s142_s29, 4  ;;  %p404_p12 = scmp.ge.s32.totalorder %s587_s14, 1  ;;  %s153_s30 = int_to_ptr.vmem [resolvable:$true] %s152_s30 }
  0x15   : > { %p177_p13 = scmp.lt.s32.totalorder %s587_s14, 3  ;;  %s139_s4 = scalar_lea.sflag [#allocation3], %s657_s22 }
  0x16   : > { %p479_p0 = pneg %p667_p11  ;;  %s490_s5 = scalar_lea.vmem %s153_s30, 64 }
  0x17   : > { %p491_p1 = scmp.ne.s32.totalorder %s153_s30, %s490_s5  ;;  %s589_s6 = smov [#allocation2]  }
  0x18   : > { %s495_s7 = sshll.u32 %s589_s6, 4  ;;  %s496_s7 = int_to_ptr.vmem [resolvable:$false] %s495_s7 }
  0x19   : > { %p493_p2 = pnand %p491_p1, %p479_p0  ;;  %s497_s8 = scalar_lea.vmem %s496_s7, 128 }
  0x1a   : > { %p498_p4 = scmp.lt.s32.totalorder %s153_s30, %s496_s7  ;;  %p499_p5 = scmp.lt.s32.totalorder %s497_s8, %s490_s5 }
  0x1b   : > { %p494_p3 = pneg %p493_p2 }
  0x1c   : > { %p500_p6 = por %p499_p5, %p498_p4 }
  0x1e   : > { %p501_p7 = pnand %p500_p6, %p494_p3 }
  0x20   : > { %504 = shalt.err (!%p501_p7)
}
  0x21   : > { %419 = dma.hbm_to_vmem [thread:$0]  (!%p667_p11), %s150_s28, 64, %s153_s30, %s139_s4  }
  0x22   : > { %p685_p9 = pnand %p404_p12, %p177_p13  ;;  %s403_s15 = sshll.u32 %s644_s18, 4 }
  0x23   : > { %s170_s21 = scalar_lea.hbm %s750_s1, %s403_s15  ;;  %s162_s23 = scalar_lea.vmem [#allocation4], %s657_s22 }
  0x24   : > { %s172_s25 = sshll.u32 %s162_s23, 4  ;;  %s160_s26 = scalar_lea.sflag [#allocation5], %s657_s22  ;;  %s173_s25 = int_to_ptr.vmem [resolvable:$true] %s172_s25 }
  0x25   : > { %s518_s27 = scalar_lea.vmem %s173_s25, 16  ;;  %s590_s28 = smov [#allocation4]  }
  0x26   : > { %p519_p10 = scmp.ne.s32.totalorder %s173_s25, %s518_s27  ;;  %s523_s29 = sshll.u32 %s590_s28, 4  ;;  %s524_s29 = int_to_ptr.vmem [resolvable:$false] %s523_s29 }
  0x27   : > { %s525_s30 = scalar_lea.vmem %s524_s29, 32  ;;  %p526_p12 = scmp.lt.s32.totalorder %s173_s25, %s524_s29 }
  0x28   : > { %p521_p1 = pnand %p519_p10, %p479_p0  ;;  %p527_p13 = scmp.lt.s32.totalorder %s525_s30, %s518_s27 }
  0x2a   : > { %p522_p2 = pneg %p521_p1  ;;  %p528_p3 = por %p527_p13, %p526_p12 }
  0x2c   : > { %p529_p4 = pnand %p528_p3, %p522_p2 }
  0x2e   : > { %532 = shalt.err (!%p529_p4)
}
  0x2f   : > { %422 = dma.hbm_to_vmem [thread:$0]  (!%p667_p11), %s170_s21, 16, %s173_s25, %s160_s26  }
  0x30   : > { %181 = sbr.rel (%p685_p9) target bundleno = 290 (0x122), region = 28  ;;  %s183_s18 = sand.u32 (!%p685_p9), 1, %s571_s10  }
  0x31   : > { %s405_s22 = sshll.u32 (!%p685_p9), %s183_s18, 2  ;;  %s184_s4 = scalar_lea.sflag (!%p685_p9), [#allocation3], %s183_s18 }
  0x32   : > { %s187_s5 = scalar_lea.vmem (!%p685_p9), [#allocation2], %s405_s22 }
  0x35   : > { %558 = dma.done.wait (%p650_p8), %s184_s4, 64  }
  0x36   : > { %560 = vsyncadd (%p650_p8), %s184_s4, 4294967232  ;;  %s193_s6 = scalar_lea.sflag [#allocation5], %s183_s18  ;;  %s195_s7 = scalar_lea.vmem [#allocation4], %s183_s18 }
  0x37   : > { %562 = dma.done.wait (%p650_p8), %s193_s6, 16  }
  0x38   : > { %564 = vsyncadd (%p650_p8), %s193_s6, 4294967280  ;;  %p225_p11 = scmp.lt.s32.totalorder %s579_s12, 1  ;;  %s407_s3 = sshll.u32 %s579_s12, 7  ;;  %v237_v0 = vlaneseq  ;;  %vm233_vm0 = vcmask 19456   ;;  %vm250_vm2 = vcmask 1043456   ;;  %v591_v5 = vmov 0.0  }
  0x39   : > { %v244_v1 = vstv %s407_s3  ;;  %v239_v6 = vld [vmem:[%s187_s5] sm:$0xf]  ;;  %vm288_vm4 = vcmask 3072   ;;  %vm295_vm5 = vcmask 11272   ;;  %vm302_vm6 = vcmask 19472  }
  0x3a   : > { %s763_s12 = smov (!%p225_p11, %s579_s12), 1  ;;  %v243_v2 = vand.u32 127, %v237_v0  ;;  %v238_v3 = vshrl.u32 %v237_v0, 7  ;;  %v409_v7 = vld [vmem:[%s195_s7] ss:$0 sm:$0xff] }
  0x3b   : > { %s406_s8 = sshll.u32 %s763_s12, 2 }
  0x3c   : > { %v245_v4 = vadd.s32 %v244_v1, %v243_v2  ;;  %s717_s17 = scalar_lea.vmem %s751_s2, %s406_s8  ;;  %vm276_vm3 = vcmp.eq.s32.totalorder %v238_v3, %v409_v7 }
  0x3d   : > { %234 = vst.msk [vmem:[%s717_s17] sm:$0xf] %vm233_vm0, %v591_v5 }
  0x3e   : > { %vm246_vm1 = vcmp.lt.s32.totalorder %v245_v4, 200 }
  0x3f   : > { %v408_v8 = vsel %vm246_vm1, 1.0, %v591_v5  ;;  %v249_v9 = vsel %vm246_vm1, %v239_v6, 0.0 }
  0x40   : > { %v251_v10 = vsel %vm250_vm2, %v249_v9, -inf  ;;  %v277_v11 = vsel %vm276_vm3, %v408_v8, 0.0 }
  0x41   : > { %v252_v12 = vrot.slane %v251_v10, 4  ;;  %v298_v13 = vsel %vm250_vm2, %v277_v11, 0.0 }
  0x42   : > { %299 = vadd.xlane.f32.xlu1 %v298_v13 }
  0x43   : > { %v253_v14 = vmax.f32 %v251_v10, %v252_v12 }
  0x44   : > { %v283_v35 = vld [vmem:[%s717_s17] sm:$0xf] }
  0x45   : > { %v254_v15 = vrot.slane %v253_v14, 2 }
  0x47   : > { %v255_v16 = vmax.f32 %v253_v14, %v254_v15 }
  0x49   : > { %v256_v17 = vrot.slane %v255_v16, 1 }
  0x4b   : > { %v257_v18 = vmax.f32 %v255_v16, %v256_v17 }
  0x4d   : > { %v258_v19 = vsub.f32 %v249_v9, %v257_v18 }
  0x4f   : > { %v259_v20 = vmul.f32 1.442695, %v258_v19 }
  0x51   : > { %473 = vpow2.f32 %v259_v20 }
  0x5e   : > { %v474_v21 = vpop.eup %473 }
  0x5f   : > { %v261_v22 = vsel %vm250_vm2, %v474_v21, 0.0 }
  0x60   : > { %v262_v23 = vrot.slane %v261_v22, 4 }
  0x62   : > { %v263_v24 = vadd.f32 %v262_v23, %v261_v22 }
  0x64   : > { %v264_v25 = vrot.slane %v263_v24, 2 }
  0x66   : > { %v265_v26 = vadd.f32 %v264_v25, %v263_v24 }
  0x68   : > { %v266_v27 = vrot.slane %v265_v26, 1 }
  0x6a   : > { %v267_v28 = vadd.f32 %v266_v27, %v265_v26 }
  0x6c   : > { %475 = vrcp.f32 %v267_v28 }
  0x79   : > { %v476_v29 = vpop.eup %475 }
  0x7a   : > { %v270_v30 = vmul.f32 %v476_v29, %v474_v21 }
  0x7c   : > { %v278_v31 = vmul.f32 %v408_v8, %v270_v30 }
  0x7e   : > { %v279_v32 = vmul.f32 %v278_v31, %v277_v11  ;;  %v291_v34 = vsel %vm250_vm2, %v278_v31, 0.0 }
  0x80   : > { %v284_v33 = vsel %vm250_vm2, %v279_v32, 0.0 }
  0x81   : > { %285 = vadd.xlane.f32.xlu0 %v284_v33 }
  0x85   : > { %292 = vadd.xlane.f32.xlu0 %v291_v34 }
  0xcb   : > { %v300_v41 = vpop.xlane.xlu1 %299 }
 0x10a   : > { %v286_v36 = vpop.xlane.xlu0 %285 }
 0x10b   : > { %v287_v37 = vadd.f32 %v286_v36, %v283_v35 }
 0x10d   : > { %289 = vst.msk [vmem:[%s717_s17] sm:$0xf] %vm288_vm4, %v287_v37 }
 0x10e   : > { %v293_v38 = vpop.xlane.xlu0 %292 }
 0x114   : > { %v290_v39 = vld [vmem:[%s717_s17] sm:$0xf] }
 0x115   : > { %v294_v40 = vadd.f32 %v293_v38, %v290_v39 }
 0x117   : > { %296 = vst.msk [vmem:[%s717_s17] sm:$0xf] %vm295_vm5, %v294_v40 }
 0x11e   : > { %v297_v42 = vld [vmem:[%s717_s17] sm:$0xf] }
 0x11f   : > { %v301_v43 = vadd.f32 %v300_v41, %v297_v42 }
 0x121   : > { %303 = vst.msk [vmem:[%s717_s17] sm:$0xf] %vm302_vm6, %v301_v43 }
 0x122 PF: > { %s18_s14 = sadd.s32 1, %s587_s14   ;;  %s755_s9 = smov %s571_s10 }
 0x123   : > { %p15_p8 = scmp.ge.s32.totalorder %s18_s14, 4   ;;  %s756_s10 = smov %s575_s11 }
 0x124   : > { %s757_s11 = smov %s661_s24  ;;  %s758_s12 = smov %s583_s13 }
 0x125   : > { %s759_s13 = smov %s761_s16  ;;  %17 = sbr.rel (!%p15_p8) target bundleno = 6 (0x6), region = 85 }
 0x12a   :  { %323 = vsyncpa [#allocation3], 1 }
 0x12b   :  { %325 = vsyncpa [#allocation3 + $0x1], 1 }
 0x12c   :  { %326 = vsyncpa [#allocation5], 1 }
 0x12d   :  { %328 = vsyncpa [#allocation5 + $0x1], 1 }

</bundles_post_ra>
